<compile_context>
chip_gen: v5e
topology: v5e:2x2
jax: 0.10.0
libtpu: 0.0.40
codegen_flags: <defaults>
</compile_context>

<pallas_src>
import functools

import jax
import jax.numpy as jnp
from jax.experimental import pallas as pl
from jax.experimental.pallas import tpu as pltpu

MAX_SIGMA = 10.0
MIN_SIGMA = 0.0001
LN_EPS = 1e-5


def _transition_kernel(x_ref, w1_ref, ln_ref, wcat_ref, bcat_ref, out_ref, *,
                       feat_dim):
    """One batch tile.

    x_ref    : [TB, D_in]            f32
    w1_ref   : [D_in, W]             bf16
    ln_ref   : [3, W]                f32   (rows: b1, gamma, beta)
    wcat_ref : [W, 2*F]              bf16  (columns: [w_mu | w_sigma])
    bcat_ref : [1, 2*F]              f32   ([b_mu | b_sigma])
    out_ref  : [TB, 2*F]             f32   ([mu | sigma])
    """
    # fc: bf16 matmul on the MXU, f32 accumulation.
    x_bf = x_ref[...].astype(jnp.bfloat16)
    h = jnp.dot(x_bf, w1_ref[...], preferred_element_type=jnp.float32)

    ln = ln_ref[...]                      # [3, W]
    h = h + ln[0:1, :]                    # + b1

    # LayerNorm over the feature (lane) axis, single-pass statistics.
    m1 = jnp.mean(h, axis=-1, keepdims=True)
    m2 = jnp.mean(h * h, axis=-1, keepdims=True)
    var = jnp.maximum(m2 - m1 * m1, 0.0)
    h = (h - m1) * jax.lax.rsqrt(var + LN_EPS)
    h = h * ln[1:2, :] + ln[2:3, :]       # affine (gamma, beta)

    # ReLU
    h = jnp.maximum(h, 0.0)

    # Fused [mu | sigma] matmul: one MXU pass, one lane-dense output.
    z = jnp.dot(h.astype(jnp.bfloat16), wcat_ref[...],
                preferred_element_type=jnp.float32) + bcat_ref[...]

    # Stable softplus + affine rescale, applied only to the sigma half via a
    # lane mask (avoids cross-lane slicing/concat inside the kernel; the extra
    # EUP work on the mu half rides in an otherwise-free slot).
    sp = jnp.maximum(z, 0.0) + jnp.log1p(jnp.exp(-jnp.abs(z)))
    sig = MIN_SIGMA + (MAX_SIGMA - MIN_SIGMA) * sp
    col = jax.lax.broadcasted_iota(jnp.int32, z.shape, dimension=1)
    out_ref[...] = jnp.where(col < feat_dim, z, sig)


def probabilistic_transition_forward(x, params, *, block_b=1024):
    """x: [B, encoder_feature_dim + action_shape] -> (mu, sigma), each [B, F]."""
    w1, b1, gamma, beta, w_mu, b_mu, w_sigma, b_sigma = params
    B, d_in = x.shape
    W = w1.shape[1]
    F = w_mu.shape[1]

    # One-time packing / casting of parameters (plain XLA ops).
    w1_bf = w1.astype(jnp.bfloat16)                              # [D_in, W]
    w_cat = jnp.concatenate([w_mu, w_sigma], axis=1).astype(jnp.bfloat16)  # [W, 2F]
    b_cat = jnp.concatenate([b_mu, b_sigma], axis=1)             # [1, 2F]
    ln_pack = jnp.concatenate([b1, gamma, beta], axis=0)         # [3, W]

    # Batch tile: full batch if small, otherwise 8-aligned tiles of block_b rows.
    tb = B if B <= block_b else block_b
    grid = (pl.cdiv(B, tb),)

    kernel = functools.partial(_transition_kernel, feat_dim=F)

    out = pl.pallas_call(
        kernel,
        out_shape=jax.ShapeDtypeStruct((B, 2 * F), jnp.float32),
        grid=grid,
        in_specs=[
            pl.BlockSpec((tb, d_in), lambda i: (i, 0)),     # x: tiled over batch
            pl.BlockSpec((d_in, W), lambda i: (0, 0)),      # w1: resident
            pl.BlockSpec((3, W), lambda i: (0, 0)),         # (b1,gamma,beta): resident
            pl.BlockSpec((W, 2 * F), lambda i: (0, 0)),     # [w_mu|w_sigma]: resident
            pl.BlockSpec((1, 2 * F), lambda i: (0, 0)),     # [b_mu|b_sigma]: resident
        ],
        out_specs=pl.BlockSpec((tb, 2 * F), lambda i: (i, 0)),
        compiler_params=pltpu.CompilerParams(
            dimension_semantics=("parallel",),
        ),
    )(x, w1_bf, ln_pack, w_cat, b_cat)

    mu = out[:, :F]
    sigma = out[:, F:]
    return mu, sigma


def init_params(key, encoder_feature_dim, action_shape, layer_width):
    """Deterministic synthetic parameters with nn.Linear-style shapes/init."""
    in_dim = encoder_feature_dim + action_shape
    ks = jax.random.split(key, 6)

    def lin(kw, kb, fan_in, fan_out):
        bound = 1.0 / jnp.sqrt(fan_in)
        w = jax.random.uniform(kw, (fan_in, fan_out), jnp.float32, -bound, bound)
        b = jax.random.uniform(kb, (1, fan_out), jnp.float32, -bound, bound)
        return w, b

    w1, b1 = lin(ks[0], ks[1], in_dim, layer_width)
    w_mu, b_mu = lin(ks[2], ks[3], layer_width, encoder_feature_dim)
    w_sigma, b_sigma = lin(ks[4], ks[5], layer_width, encoder_feature_dim)
    gamma = jnp.ones((1, layer_width), jnp.float32)   # LayerNorm weight
    beta = jnp.zeros((1, layer_width), jnp.float32)   # LayerNorm bias
    return (w1, b1, gamma, beta, w_mu, b_mu, w_sigma, b_sigma)


def _reference_forward(x, params):
    """Pure-JAX reference using the same bf16 matmul precision as the kernel."""
    w1, b1, gamma, beta, w_mu, b_mu, w_sigma, b_sigma = params
    x_bf = x.astype(jnp.bfloat16)
    h = jnp.dot(x_bf, w1.astype(jnp.bfloat16),
                preferred_element_type=jnp.float32) + b1
    mean = h.mean(-1, keepdims=True)
    var = jnp.maximum((h * h).mean(-1, keepdims=True) - mean * mean, 0.0)
    h = (h - mean) * jax.lax.rsqrt(var + LN_EPS) * gamma + beta
    h = jax.nn.relu(h)
    h_bf = h.astype(jnp.bfloat16)
    mu = jnp.dot(h_bf, w_mu.astype(jnp.bfloat16),
                 preferred_element_type=jnp.float32) + b_mu
    s = jnp.dot(h_bf, w_sigma.astype(jnp.bfloat16),
                preferred_element_type=jnp.float32) + b_sigma
    sigma = MIN_SIGMA + (MAX_SIGMA - MIN_SIGMA) * jax.nn.softplus(s)
    return mu, sigma


if __name__ == "__main__":
    encoder_feature_dim = 32
    action_shape = 8
    layer_width = 64
    batch = 8

    key = jax.random.PRNGKey(0)
    k_params, k_x = jax.random.split(key)
    params = init_params(k_params, encoder_feature_dim, action_shape, layer_width)
    x = jax.random.normal(k_x, (batch, encoder_feature_dim + action_shape),
                          jnp.float32)

    mu, sigma = probabilistic_transition_forward(x, params)
    jax.block_until_ready((mu, sigma))

    mu_ref, sigma_ref = _reference_forward(x, params)
    assert mu.shape == (batch, encoder_feature_dim)
    assert sigma.shape == (batch, encoder_feature_dim)
    assert jnp.allclose(mu, mu_ref, atol=2e-3, rtol=2e-3)
    assert jnp.allclose(sigma, sigma_ref, atol=2e-3, rtol=2e-3)

    # TODO(synk): sample_prediction (mu + sigma * randn) is left to the caller;
    # only the forward pass is implemented as a kernel.

    print("KERNEL_OK")
</pallas_src>

<mosaic_0001>
module attributes {stable_mosaic.version = 11 : i64} {
  func.func @_transition_kernel(%arg0: i32, %arg1: memref<8x40xf32, #tpu.memory_space<vmem>>, %arg2: memref<40x64xbf16, #tpu.memory_space<vmem>>, %arg3: memref<3x64xf32, #tpu.memory_space<vmem>>, %arg4: memref<64x64xbf16, #tpu.memory_space<vmem>>, %arg5: memref<1x64xf32, #tpu.memory_space<vmem>>, %arg6: memref<8x64xf32, #tpu.memory_space<vmem>>) attributes {dimension_semantics = [#tpu.dimension_semantics<parallel>], iteration_bounds = array<i64: 1>, scalar_prefetch = 0 : i64, scratch_operands = 0 : i64, tpu.core_type = #tpu.core_type<tc>, window_params = [{transform_indices = @transform_0, window_bounds = array<i64: 8, 40>}, {pipeline_mode = #tpu.pipeline_mode<synchronous>, transform_indices = @transform_1, window_bounds = array<i64: 40, 64>}, {pipeline_mode = #tpu.pipeline_mode<synchronous>, transform_indices = @transform_2, window_bounds = array<i64: 3, 64>}, {pipeline_mode = #tpu.pipeline_mode<synchronous>, transform_indices = @transform_3, window_bounds = array<i64: 64, 64>}, {pipeline_mode = #tpu.pipeline_mode<synchronous>, transform_indices = @transform_4, window_bounds = array<i64: 1, 64>}, {transform_indices = @transform_5, window_bounds = array<i64: 8, 64>}]} {
    %c0 = arith.constant 0 : index
    %c0_0 = arith.constant 0 : index
    %0 = vector.load %arg1[%c0, %c0_0] : memref<8x40xf32, #tpu.memory_space<vmem>>, vector<8x40xf32>
    %1 = arith.truncf %0 : vector<8x40xf32> to vector<8x40xbf16>
    %c0_1 = arith.constant 0 : index
    %c0_2 = arith.constant 0 : index
    %2 = vector.load %arg2[%c0_1, %c0_2] : memref<40x64xbf16, #tpu.memory_space<vmem>>, vector<40x64xbf16>
    %cst = arith.constant dense<0.000000e+00> : vector<8x64xf32>
    %3 = tpu.matmul %1, %2, %cst {dimension_numbers = #tpu.dot_dimension_numbers<[1], [0], [0], [1], [0, 0, 1, 1], [], []>} : vector<8x40xbf16>, vector<40x64xbf16>, vector<8x64xf32> -> vector<8x64xf32>
    %c0_3 = arith.constant 0 : index
    %c0_4 = arith.constant 0 : index
    %4 = vector.load %arg3[%c0_3, %c0_4] : memref<3x64xf32, #tpu.memory_space<vmem>>, vector<3x64xf32>
    %5 = vector.extract_strided_slice %4 {offsets = [0, 0], sizes = [1, 64], strides = [1, 1]} : vector<3x64xf32> to vector<1x64xf32>
    %6 = vector.broadcast %5 : vector<1x64xf32> to vector<8x64xf32>
    %7 = arith.addf %3, %6 : vector<8x64xf32>
    %cst_5 = arith.constant dense<0.000000e+00> : vector<8xf32>
    %8 = vector.multi_reduction <add>, %7, %cst_5 [1] : vector<8x64xf32> to vector<8xf32>
    %9 = vector.shape_cast %8 : vector<8xf32> to vector<8x1xf32>
    %cst_6 = arith.constant 6.400000e+01 : f32
    %10 = vector.broadcast %cst_6 : f32 to vector<8x1xf32>
    %11 = arith.divf %9, %10 : vector<8x1xf32>
    %12 = arith.mulf %7, %7 : vector<8x64xf32>
    %cst_7 = arith.constant dense<0.000000e+00> : vector<8xf32>
    %13 = vector.multi_reduction <add>, %12, %cst_7 [1] : vector<8x64xf32> to vector<8xf32>
    %14 = vector.shape_cast %13 : vector<8xf32> to vector<8x1xf32>
    %cst_8 = arith.constant 6.400000e+01 : f32
    %15 = vector.broadcast %cst_8 : f32 to vector<8x1xf32>
    %16 = arith.divf %14, %15 : vector<8x1xf32>
    %17 = arith.mulf %11, %11 : vector<8x1xf32>
    %18 = arith.subf %16, %17 : vector<8x1xf32>
    %cst_9 = arith.constant 0.000000e+00 : f32
    %19 = vector.broadcast %cst_9 : f32 to vector<8x1xf32>
    %20 = arith.maximumf %18, %19 : vector<8x1xf32>
    %21 = vector.broadcast %11 : vector<8x1xf32> to vector<8x64xf32>
    %22 = arith.subf %7, %21 : vector<8x64xf32>
    %cst_10 = arith.constant 9.99999974E-6 : f32
    %23 = vector.broadcast %cst_10 : f32 to vector<8x1xf32>
    %24 = arith.addf %20, %23 : vector<8x1xf32>
    %25 = math.rsqrt %24 : vector<8x1xf32>
    %26 = vector.broadcast %25 : vector<8x1xf32> to vector<8x64xf32>
    %27 = arith.mulf %22, %26 : vector<8x64xf32>
    %28 = vector.extract_strided_slice %4 {offsets = [1, 0], sizes = [1, 64], strides = [1, 1]} : vector<3x64xf32> to vector<1x64xf32>
    %29 = vector.broadcast %28 : vector<1x64xf32> to vector<8x64xf32>
    %30 = arith.mulf %27, %29 : vector<8x64xf32>
    %31 = vector.extract_strided_slice %4 {offsets = [2, 0], sizes = [1, 64], strides = [1, 1]} : vector<3x64xf32> to vector<1x64xf32>
    %32 = vector.broadcast %31 : vector<1x64xf32> to vector<8x64xf32>
    %33 = arith.addf %30, %32 : vector<8x64xf32>
    %cst_11 = arith.constant 0.000000e+00 : f32
    %34 = vector.broadcast %cst_11 : f32 to vector<8x64xf32>
    %35 = arith.maximumf %33, %34 : vector<8x64xf32>
    %36 = arith.truncf %35 : vector<8x64xf32> to vector<8x64xbf16>
    %c0_12 = arith.constant 0 : index
    %c0_13 = arith.constant 0 : index
    %37 = vector.load %arg4[%c0_12, %c0_13] : memref<64x64xbf16, #tpu.memory_space<vmem>>, vector<64x64xbf16>
    %cst_14 = arith.constant dense<0.000000e+00> : vector<8x64xf32>
    %38 = tpu.matmul %36, %37, %cst_14 {dimension_numbers = #tpu.dot_dimension_numbers<[1], [0], [0], [1], [0, 0, 1, 1], [], []>} : vector<8x64xbf16>, vector<64x64xbf16>, vector<8x64xf32> -> vector<8x64xf32>
    %c0_15 = arith.constant 0 : index
    %c0_16 = arith.constant 0 : index
    %39 = vector.load %arg5[%c0_15, %c0_16] : memref<1x64xf32, #tpu.memory_space<vmem>>, vector<1x64xf32>
    %40 = vector.broadcast %39 : vector<1x64xf32> to vector<8x64xf32>
    %41 = arith.addf %38, %40 : vector<8x64xf32>
    %cst_17 = arith.constant 0.000000e+00 : f32
    %42 = vector.broadcast %cst_17 : f32 to vector<8x64xf32>
    %43 = arith.maximumf %41, %42 : vector<8x64xf32>
    %44 = math.absf %41 : vector<8x64xf32>
    %cst_18 = arith.constant 0.000000e+00 : f32
    %45 = vector.broadcast %cst_18 : f32 to vector<8x64xf32>
    %46 = arith.subf %45, %44 : vector<8x64xf32>
    %47 = math.exp %46 : vector<8x64xf32>
    %48 = math.log1p %47 : vector<8x64xf32>
    %49 = arith.addf %43, %48 : vector<8x64xf32>
    %cst_19 = arith.constant 9.99989986 : f32
    %50 = vector.broadcast %cst_19 : f32 to vector<8x64xf32>
    %51 = arith.mulf %50, %49 : vector<8x64xf32>
    %cst_20 = arith.constant 9.99999974E-5 : f32
    %52 = vector.broadcast %cst_20 : f32 to vector<8x64xf32>
    %53 = arith.addf %52, %51 : vector<8x64xf32>
    %54 = tpu.iota {dimensions = array<i32: 1>} : vector<8x64xi32>
    %c32_i32 = arith.constant 32 : i32
    %55 = vector.broadcast %c32_i32 : i32 to vector<8x64xi32>
    %56 = arith.cmpi slt, %54, %55 : vector<8x64xi32>
    %57 = arith.select %56, %41, %53 : vector<8x64xi1>, vector<8x64xf32>
    %c0_21 = arith.constant 0 : index
    %c0_22 = arith.constant 0 : index
    %58 = vector.load %arg6[%c0_21, %c0_22] : memref<8x64xf32, #tpu.memory_space<vmem>>, vector<8x64xf32>
    tpu.vector_store %arg6[%c0_21, %c0_22], %57 {strides = array<i32>} : memref<8x64xf32, #tpu.memory_space<vmem>>, vector<8x64xf32>,
    return
  }
  func.func @transform_0(%arg0: i32) -> (i32, i32) {
    %c0_i32 = arith.constant 0 : i32
    %c0_i32_0 = arith.constant 0 : i32
    return %arg0, %c0_i32 : i32, i32
  }
  func.func @transform_1(%arg0: i32) -> (i32, i32) {
    %c0_i32 = arith.constant 0 : i32
    %c0_i32_0 = arith.constant 0 : i32
    %c0_i32_1 = arith.constant 0 : i32
    return %c0_i32, %c0_i32_0 : i32, i32
  }
  func.func @transform_2(%arg0: i32) -> (i32, i32) {
    %c0_i32 = arith.constant 0 : i32
    %c0_i32_0 = arith.constant 0 : i32
    %c0_i32_1 = arith.constant 0 : i32
    return %c0_i32, %c0_i32_0 : i32, i32
  }
  func.func @transform_3(%arg0: i32) -> (i32, i32) {
    %c0_i32 = arith.constant 0 : i32
    %c0_i32_0 = arith.constant 0 : i32
    %c0_i32_1 = arith.constant 0 : i32
    return %c0_i32, %c0_i32_0 : i32, i32
  }
  func.func @transform_4(%arg0: i32) -> (i32, i32) {
    %c0_i32 = arith.constant 0 : i32
    %c0_i32_0 = arith.constant 0 : i32
    %c0_i32_1 = arith.constant 0 : i32
    return %c0_i32, %c0_i32_0 : i32, i32
  }
  func.func @transform_5(%arg0: i32) -> (i32, i32) {
    %c0_i32 = arith.constant 0 : i32
    %c0_i32_0 = arith.constant 0 : i32
    return %arg0, %c0_i32 : i32, i32
  }
}

</mosaic_0001>

<bundles_post_ra>
// kernel: tpu_custom_call.1
= control target key start
LH: loop header
LB: loop body
LE: loop exit
PB: predicated region body
PF: predicated region fallthrough
CT: control target
= control target key end

     0   :  { %10 = vsyncpa [#allocation3], 0  ;;  %s495_s0 = inlined_call_operand.hbm [shape: f32[8,40], index: 0, kind: input, shape index: {}]   ;;  %s496_s1 = inlined_call_operand.hbm [shape: bf16[40,64], index: 1, kind: input, shape index: {}]   ;;  %s497_s2 = inlined_call_operand.hbm [shape: f32[3,64], index: 2, kind: input, shape index: {}]   ;;  %s498_s3 = inlined_call_operand.hbm [shape: bf16[64,64], index: 3, kind: input, shape index: {}]   ;;  %s499_s4 = inlined_call_operand.vmem [shape: f32[1,64], index: 4, kind: input, shape index: {}]   ;;  %s500_s5 = inlined_call_operand.hbm [shape: f32[8,64], index: 5, kind: output, shape index: {}]  }
   0x1   :  { %11 = vsyncpa [#allocation6], 0 }
   0x2   :  { %12 = vsyncpa [#allocation9], 0  ;;  %s29_s20 = sshll.u32 %s496_s1, 4  ;;  %s30_s20 = int_to_ptr.hbm [resolvable:$true] %s29_s20 }
   0x3   :  { %13 = vsyncpa [#allocation4], 0  ;;  %s435_s21 = smov [#allocation5]   ;;  %s19_s25 = sshll.u32 %s495_s0, 4  ;;  %s20_s25 = int_to_ptr.hbm [resolvable:$true] %s19_s25 }
   0x4   :  { %s31_s22 = sshll.u32 %s435_s21, 4  ;;  %s436_s26 = smov 64   ;;  %s32_s22 = int_to_ptr.vmem [resolvable:$true] %s31_s22 }
   0x5   :  { %s437_s27 = smov 4   ;;  %s438_s28 = smov [#allocation2]  }
   0x6   :  { %37 = dma.hbm_to_vmem [thread:$0]  %s30_s20, 320, %s32_s22, [#allocation6], %s436_s26, %s436_s26, %s437_s27  }
   0x7   :  { %s21_s29 = sshll.u32 %s438_s28, 4  ;;  %s43_s7 = sshll.u32 %s497_s2, 4  ;;  %s22_s29 = int_to_ptr.vmem [resolvable:$true] %s21_s29  ;;  %s44_s7 = int_to_ptr.hbm [resolvable:$true] %s43_s7 }
   0x8   :  { %24 = dma.hbm_to_vmem [thread:$0]  %s20_s25, 128, %s22_s29, [#allocation3]  }
   0x9   :  { %s53_s9 = sshll.u32 %s498_s3, 4  ;;  %s439_s10 = smov [#allocation7]   ;;  %s54_s9 = int_to_ptr.hbm [resolvable:$true] %s53_s9 }
   0xa   :  { %s45_s11 = sshll.u32 %s439_s10, 4  ;;  %s440_s0 = smov [#allocation8]   ;;  %s46_s11 = int_to_ptr.vmem [resolvable:$true] %s45_s11 }
   0xb   :  { %48 = dma.hbm_to_vmem [thread:$0]  %s44_s7, 64, %s46_s11, [#allocation6]  }
   0xc   :  { %s55_s12 = sshll.u32 %s440_s0, 4  ;;  %s56_s12 = int_to_ptr.vmem [resolvable:$true] %s55_s12 }
   0xd   :  { %61 = dma.hbm_to_vmem [thread:$0]  %s54_s9, 512, %s56_s12, [#allocation9], %s436_s26, %s436_s26, %s437_s27  }
   0xe   :  { %427 = dma.done.wait [#allocation3], 128  }
   0xf   :  { %428 = vsyncadd [#allocation3], 4294967168 }
  0x10   :  { %429 = dma.done.wait [#allocation6], 384  }
  0x11   :  { %430 = vsyncadd [#allocation6], 4294966912 }
  0x12   :  { %431 = dma.done.wait [#allocation9], 512  }
  0x13   :  { %432 = vsyncadd [#allocation9], 4294966784  ;;  %v87_v0 = vld [vmem:[#allocation5 + $0x10] sm:$0xf]  ;;  %vm109_vm0 = vcmask 1043456   ;;  %v285_v4 = vld [vmem:[#allocation5 + $0x8] sm:$0xff]  ;;  %v234_v62 = vlaneseq }
  0x14   :  { %v99_v1 = vunpack.c.l.b16 %v87_v0  ;;  %v284_v5 = vld [vmem:[#allocation5] sm:$0xff]  ;;  %v81_v6 = vld [vmem:[#allocation2] sm:$0xff]  ;;  %vm105_vm1 = vcmask 326656   ;;  %v88_v8 = vld [vmem:[#allocation7] sm:$0x7]  ;;  %vm126_vm2 = vcmask 523264  }
  0x15   :  { %v82_v7 = vpack.c.bf16 %v81_v6, %v81_v6  ;;  %v89_v9 = vperm.slane %v88_v8, 0  ;;  %v441_v16 = vmov 64.0   ;;  %v289_v21 = vld [vmem:[#allocation8 + $0x18] sm:$0xff]  ;;  %v288_v24 = vld [vmem:[#allocation8 + $0x10] sm:$0xff]  ;;  %v287_v26 = vld [vmem:[#allocation8 + $0x8] sm:$0xff]  ;;  %v159_v41 = vperm.slane %v88_v8, 1 }
  0x16   :  { %v102_v2 = vpack.c.b16 %v99_v1, %v99_v1  ;;  %299 = vrcp.f32 %v441_v16  ;;  %208 = vmatpush.bf16.msra.mxu1 %v289_v21  ;;  %v286_v28 = vld [vmem:[#allocation8] sm:$0xff]  ;;  %v161_v45 = vperm.slane %v88_v8, 2  ;;  %s246_s16 = sshll.u32 %s500_s5, 4  ;;  %s247_s16 = int_to_ptr.hbm [resolvable:$true] %s246_s16 }
  0x17   :  { %v298_v50 = vld [vmem:[%s499_s4] ss:$0 sm:$0xff]  ;;  %s442_s4 = smov [#allocation10]  }
  0x18   :  { %v111_v3 = vsel %vm109_vm0, %v102_v2, 0  ;;  %s244_s13 = sshll.u32 %s442_s4, 4  ;;  %s245_s13 = int_to_ptr.vmem [resolvable:$true] %s244_s13 }
  0x19   :  { %118 = vmatpush.bf16.msra.mxu0 %v111_v3 }
  0x1a   :  { %209 = vmatpush.bf16.msra.mxu1 %v288_v24 }
  0x1c   :  { %v300_v17 = vpop.eup %299 }
  0x1d   :  { %119 = vmatpush.bf16.msra.mxu0 %v285_v4  ;;  %v131_v18 = vmul.f32 64.0, %v300_v17  ;;  %vm135_vm3 = vweird.f32 %v300_v17  ;;  %v235_v4 = vand.u32 127, %v234_v62 }
  0x1e   :  { %210 = vmatpush.bf16.msra.mxu1 %v287_v26 }
  0x1f   :  { %v132_v19 = vsub.f32 1.0, %v131_v18  ;;  %vm236_vm8 = vcmp.lt.s32.totalorder %v235_v4, 32 }
  0x21   :  { %120 = vmatpush.bf16.msra.mxu0 %v284_v5  ;;  %v133_v20 = vmul.f32 %v300_v17, %v132_v19 }
  0x22   :  { %211 = vmatpush.bf16.msra.mxu1 %v286_v28 }
  0x23   :  { %v134_v22 = vadd.f32 %v300_v17, %v133_v20 }
  0x24   :  { %266 = vmatmul.msk.bf16.vlgmr.msra.gmra.mxu0 %vm105_vm1, %v82_v7 }
  0x25   :  { %v136_v25 = vsel %vm135_vm3, %v300_v17, %v134_v22 }
  0xa1   :  { %v122_v10 = vpop.f32.mrf.mxu0 }
  0xa2   :  { %v123_v11 = vadd.f32 %v122_v10, %v89_v9 }
  0xa4   :  { %v127_v12 = vsel %vm126_vm2, %v123_v11, 0.0  ;;  %v138_v13 = vmul.f32 %v123_v11, %v123_v11 }
  0xa5   :  { %128 = vadd.xlane.f32.xlu0 %v127_v12 }
  0xa6   :  { %v139_v15 = vsel %vm126_vm2, %v138_v13, 0.0 }
  0xa9   :  { %v124_v14 = vpop.f32.mrf.mxu0 }
  0xad   :  { %140 = vadd.xlane.f32.xlu0 %v139_v15 }
 0x118   :  { %v129_v23 = vpop.xlane.xlu0 %128 }
 0x119   :  { %v137_v27 = vmul.f32 %v136_v25, %v129_v23 }
 0x11b   :  { %v143_v30 = vmul.f32 %v137_v27, %v137_v27  ;;  %v146_v42 = vsub.f32 %v123_v11, %v137_v27 }
 0x120   :  { %v141_v29 = vpop.xlane.xlu0 %140 }
 0x121   :  { %v142_v31 = vmul.f32 %v141_v29, %v136_v25 }
 0x123   :  { %v144_v32 = vsub.f32 %v142_v31, %v143_v30 }
 0x125   :  { %v145_v33 = vmax.f32 %v144_v32, 0.0 }
 0x127   :  { %v147_v34 = vadd.f32 1e-05, %v145_v33 }
 0x129   :  { %301 = vrsqrt.f32 %v147_v34  ;;  %vm154_vm5 = vweird.f32 %v147_v34 }
 0x12f   :  { %v302_v35 = vpop.eup %301 }
 0x130   :  { %v149_v36 = vmul.f32 %v302_v35, %v147_v34  ;;  %vm155_vm4 = vweird.f32 %v302_v35 }
 0x131   :  { %vm156_vm6 = vmor %vm154_vm5, %vm155_vm4 }
 0x132   :  { %v150_v37 = vmul.f32 %v302_v35, %v149_v36 }
 0x134   :  { %v151_v38 = vmul.f32 0.5, %v150_v37 }
 0x136   :  { %v152_v39 = vsub.f32 1.5, %v151_v38 }
 0x138   :  { %v153_v40 = vmul.f32 %v302_v35, %v152_v39 }
 0x13a   :  { %v157_v43 = vsel %vm156_vm6, %v302_v35, %v153_v40 }
 0x13b   :  { %v158_v44 = vmul.f32 %v157_v43, %v146_v42 }
 0x13d   :  { %v160_v46 = vmul.f32 %v159_v41, %v158_v44 }
 0x13f   :  { %v162_v47 = vadd.f32 %v161_v45, %v160_v46 }
 0x141   :  { %v163_v48 = vmax.f32 %v162_v47, 0.0 }
 0x143   :  { %v164_v49 = vpack.c.bf16 %v163_v48, %v163_v48 }
 0x145   :  { %283 = vmatmul.msk.bf16.vlgmr.msra.gmra.mxu1 %vm126_vm2, %v164_v49 }
 0x1c2   :  { %v213_v51 = vpop.f32.mrf.mxu1 }
 0x1c3   :  { %v214_v52 = vadd.f32 %v298_v50, %v213_v51 }
 0x1c5   :  { %v218_v53 = vand.u32 2147483647, %v214_v52  ;;  %v217_v2 = vmax.f32 %v214_v52, 0.0 }
 0x1c7   :  { %v219_v54 = vsub.f32 0.0, %v218_v53 }
 0x1c9   :  { %v220_v55 = vmul.f32 1.442695, %v219_v54 }
 0x1ca   :  { %v215_v56 = vpop.f32.mrf.mxu1 }
 0x1cb   :  { %303 = vpow2.f32 %v220_v55 }
 0x1d1   :  { %v304_v57 = vpop.eup %303 }
 0x1d2   :  { %v222_v58 = vadd.f32 1.0, %v304_v57  ;;  %v225_v59 = vmul.f32 -0.5, %v304_v57  ;;  %v228_v61 = vand.u32 2147483647, %v304_v57 }
 0x1d4   :  { %305 = vlog2.f32 %v222_v58  ;;  %v226_v60 = vadd.f32 1.0, %v225_v59  ;;  %vm229_vm7 = vcmp.lt.f32.partialorder %v228_v61, 0.0004427343 }
 0x1d6   :  { %v227_v1 = vmul.f32 %v304_v57, %v226_v60 }
 0x1da   :  { %v306_v63 = vpop.eup %305 }
 0x1db   :  { %v224_v0 = vmul.f32 0.6931472, %v306_v63 }
 0x1dd   :  { %v230_v3 = vsel %vm229_vm7, %v227_v1, %v224_v0 }
 0x1de   :  { %v231_v5 = vadd.f32 %v230_v3, %v217_v2 }
 0x1e0   :  { %v232_v6 = vmul.f32 9.9999, %v231_v5 }
 0x1e2   :  { %v233_v7 = vadd.f32 0.0001, %v232_v6 }
 0x1e4   :  { %v237_v8 = vsel %vm236_vm8, %v214_v52, %v233_v7 }
 0x1e5   :  { %238 = vst.msk [vmem:[#allocation10] sm:$0xff] %vm126_vm2, %v237_v8 }
 0x1e6   :  { %249 = dma.vmem_to_hbm [thread:$0]  %s245_s13, 128, %s247_s16, [#allocation4]  }
 0x1e7   :  { %433 = dma.done.wait [#allocation4], 128  }
 0x1e8   :  { %434 = vsyncadd [#allocation4], 4294967168 }
 0x1e9   :  { %254 = vsyncpa [#allocation3], 1 }
 0x1ea   :  { %255 = vsyncpa [#allocation6], 1 }
 0x1eb   :  { %256 = vsyncpa [#allocation9], 1 }
 0x1ec   :  { %257 = vsyncpa [#allocation4], 1 }

</bundles_post_ra>
